<compile_context>
chip_gen: v5e
topology: v5e:2x2
jax: 0.10.0
libtpu: 0.0.40
codegen_flags: <defaults>
</compile_context>

<pallas_src>
import math
from functools import partial

import numpy as np
import jax
import jax.numpy as jnp
from jax.experimental import pallas as pl
from jax.experimental.pallas import tpu as pltpu


def _round_up(v: int, m: int) -> int:
    return ((v + m - 1) // m) * m


def _cv2_linear_coords(n_src: int, n_dst: int):
    """cv2.resize INTER_LINEAR source coordinates for a 1-D resize n_src -> n_dst."""
    coord = (np.arange(n_dst, dtype=np.float64) + 0.5) * (n_src / n_dst) - 0.5
    lo = np.floor(coord).astype(np.int64)
    frac = coord - lo
    frac = np.where(lo < 0, 0.0, frac)           # clamp left border
    lo = np.clip(lo, 0, n_src - 1)
    frac = np.where(lo >= n_src - 1, 0.0, frac)  # clamp right border
    hi = np.clip(lo + 1, 0, n_src - 1)
    return lo.astype(np.int32), hi.astype(np.int32), frac.astype(np.float32)


def _linear_resize_1d(sig: np.ndarray, n_dst: int) -> np.ndarray:
    """Direct gather+lerp resize (numpy reference check only)."""
    lo, hi, frac = _cv2_linear_coords(sig.shape[0], n_dst)
    return (1.0 - frac) * sig[lo] + frac * sig[hi]


def _vmem_capacity_bytes() -> int:
    """Trace-time VMEM capacity query with a conservative (v7x-sized) fallback."""
    try:
        cap = getattr(pltpu.get_tpu_info(), "vmem_capacity_bytes", None)
        if cap:
            return int(cap)
    except Exception:
        pass
    return 64 * 1024 * 1024


def _time_warp_kernel(x_ref, w_ref, o_ref):
    # x_ref: (R_pad, 2*K_pad) bf16  resident masked segment rows [x*(1-m) | x*m]
    # w_ref: (2*K_pad, tn)    bf16  stacked [W_stretch ; W_squeeze] column tile
    # o_ref: (R_pad, tn)      f32   resized output column tile (row i = segment i)
    o_ref[...] = jnp.dot(x_ref[...], w_ref[...],
                         preferred_element_type=jnp.float32)


@partial(jax.jit, static_argnames=("sr", "warps", "stretch_factor", "squeeze_factor"))
def _time_warp_impl(x, is_squeeze, *, sr, warps, stretch_factor, squeeze_factor):
    orig_dtype = x.dtype
    L = x.shape[-1]
    C = int(np.prod(x.shape[:-1])) if x.ndim > 1 else 1
    x2 = x.reshape(C, L).astype(jnp.float32)

    # ---- static geometry (matches the PyTorch/cv2 reference) -----------------
    total_time = L // sr
    seg_len = int(math.floor((total_time / warps) * sr))
    if seg_len <= 0:
        raise ValueError("signal too short for the requested sr/warps")
    n_flat = C * seg_len                                   # flattened segment length
    out_s = int(math.ceil(n_flat * stretch_factor))
    out_q = int(math.ceil(n_flat * squeeze_factor))
    n_stretch = math.ceil(warps / 2)
    n_squeeze = warps - n_stretch
    total_len = n_stretch * out_s + n_squeeze * out_q      # static output length
    max_out = max(out_s, out_q)

    # ---- padded, lane-dense layouts -------------------------------------------
    R_pad = _round_up(max(warps, 8), 8)     # segments -> sublane-aligned rows
    K_pad = _round_up(n_flat, 128)          # contraction dim per resampler
    K2 = 2 * K_pad                          # stacked [stretch ; squeeze] contraction
    N128 = _round_up(max_out, 128)          # output columns, lane-dense

    # ---- generation-aware VMEM budget & column-tile width ---------------------
    cap = _vmem_capacity_bytes()
    if cap >= 100 * 1024 * 1024:            # v5e / v6e: 128 MiB physical VMEM
        vmem_budget = 60 * 1024 * 1024
        vmem_limit = 96 * 1024 * 1024
    else:                                   # v7x: 64 MiB physical (or fallback)
        vmem_budget = min(44 * 1024 * 1024, int(cap * 0.65))
        vmem_limit = min(52 * 1024 * 1024, int(cap * 0.80))

    def per_step(tn, n_buf):
        # n_buf-deep streamed bf16 weight tile + double-buffered f32 out tile
        # + resident bf16 masked-X block (constant index_map; charged 2x to be safe).
        return (n_buf * K2 * tn * 2
                + 2 * R_pad * tn * 4
                + 2 * R_pad * K2 * 2)

    # >=2 column tiles whenever N128 > 128 so v7x megacore keeps both TCs busy.
    tn_cap = 128 if N128 <= 128 else max(128, ((N128 // 2) // 128) * 128)
    tn_cap = min(tn_cap, 4096)
    tn = 128
    cand = tn_cap
    while cand >= 128:
        if per_step(cand, 2) <= vmem_budget:
            tn = cand
            break
        cand -= 128
    N_pad = _round_up(N128, tn)
    num_tiles = N_pad // tn
    # Triple-buffer the weight stream only when the grid is long enough to matter
    # and VMEM still has headroom (mostly helps v5e's slower HBM).
    n_buf = 3 if (num_tiles >= 3 and per_step(tn, 3) <= vmem_budget) else 2

    # ---- masked, stacked segment rows (masking hoisted out of the grid loop) --
    # Segments as rows, flattened across channels exactly like `.reshape(-1, 1)`.
    x_seg = x2[:, : warps * seg_len].reshape(C, warps, seg_len)
    x_seg = jnp.transpose(x_seg, (1, 0, 2)).reshape(warps, n_flat)
    m = is_squeeze.astype(jnp.float32)[:, None]            # 1.0 = squeeze
    pad_rk = ((0, R_pad - warps), (0, K_pad - n_flat))
    x_stack = jnp.concatenate(
        [jnp.pad(x_seg * (1.0 - m), pad_rk),               # stretch half
         jnp.pad(x_seg * m, pad_rk)],                      # squeeze half
        axis=1).astype(jnp.bfloat16)                       # (R_pad, K2)

    # ---- stacked interpolation matrix built on device from O(N) index vectors -
    lo_s, hi_s, fr_s = _cv2_linear_coords(n_flat, out_s)
    lo_q, hi_q, fr_q = _cv2_linear_coords(n_flat, out_q)

    def pad_vec(a, n):
        return np.pad(a, (0, n - a.shape[0]))

    lo_s_j = jnp.asarray(pad_vec(lo_s, N_pad))[None, :]
    hi_s_j = jnp.asarray(pad_vec(hi_s, N_pad))[None, :]
    fr_s_j = jnp.asarray(pad_vec(fr_s, N_pad))[None, :]
    lo_q_j = jnp.asarray(pad_vec(lo_q, N_pad).astype(np.int64) + K_pad)[None, :]
    hi_q_j = jnp.asarray(pad_vec(hi_q, N_pad).astype(np.int64) + K_pad)[None, :]
    fr_q_j = jnp.asarray(pad_vec(fr_q, N_pad))[None, :]
    col = np.arange(N_pad)
    valid_s = jnp.asarray(col < out_s)[None, :]
    valid_q = jnp.asarray(col < out_q)[None, :]

    k_idx = jax.lax.broadcasted_iota(jnp.int32, (K2, N_pad), 0)
    w_stretch = (jnp.where(k_idx == lo_s_j, 1.0 - fr_s_j, 0.0)
                 + jnp.where(k_idx == hi_s_j, fr_s_j, 0.0))       # rows [0, K_pad)
    w_squeeze = (jnp.where(k_idx == lo_q_j, 1.0 - fr_q_j, 0.0)
                 + jnp.where(k_idx == hi_q_j, fr_q_j, 0.0))       # rows [K_pad, 2*K_pad)
    w2 = (jnp.where(valid_s, w_stretch, 0.0)
          + jnp.where(valid_q, w_squeeze, 0.0)).astype(jnp.bfloat16)  # (K2, N_pad)

    # ---- pallas call -----------------------------------------------------------
    w_spec_kwargs = {}
    if n_buf > 2:
        w_spec_kwargs["pipeline_mode"] = pl.Buffered(n_buf)

    out_padded = pl.pallas_call(
        _time_warp_kernel,
        out_shape=jax.ShapeDtypeStruct((R_pad, N_pad), jnp.float32),
        grid=(num_tiles,),
        in_specs=[
            pl.BlockSpec((R_pad, K2), lambda j: (0, 0)),                # resident rows
            pl.BlockSpec((K2, tn), lambda j: (0, j), **w_spec_kwargs),  # weight tiles
        ],
        out_specs=pl.BlockSpec((R_pad, tn), lambda j: (0, j)),
        compiler_params=pltpu.CompilerParams(
            dimension_semantics=("parallel",),     # v7x: shard column tiles across 2 TCs
            vmem_limit_bytes=vmem_limit,
        ),
    )(x_stack, w2)

    # ---- ragged re-concatenation: `warps` contiguous copies (no element gather) -
    # Row i of out_padded holds the resized segment followed by exact zeros, so a
    # fixed-length (max_out) copy per segment, written in FORWARD order, lets each
    # later segment overwrite the previous segment's zero tail.
    seg_lens = jnp.where(is_squeeze == 1, jnp.int32(out_q), jnp.int32(out_s))
    offs = jnp.concatenate(
        [jnp.zeros((1,), jnp.int32), jnp.cumsum(seg_lens).astype(jnp.int32)])
    buf = jnp.zeros((total_len + max_out,), jnp.float32)
    for i in range(warps):
        buf = jax.lax.dynamic_update_slice(buf, out_padded[i, :max_out], (offs[i],))
    return buf[:total_len].reshape(1, total_len).astype(orig_dtype)


def time_warp_pallas(x, is_squeeze, *, sr, warps, stretch_factor, squeeze_factor):
    """TimeWarp forward. x: (..., L) signal; is_squeeze: (warps,) int32 (1 = squeeze)."""
    # Host-side sanity check when the mask is concrete: the static output length
    # assumes exactly ceil(warps/2) stretched segments (as drawn by draw_warp_mask).
    try:
        n_sq = int(np.asarray(jax.device_get(is_squeeze)).sum())
    except Exception:
        n_sq = None
    expected_sq = warps - math.ceil(warps / 2)
    if n_sq is not None and n_sq != expected_sq:
        raise ValueError(
            f"is_squeeze must mark exactly {expected_sq} segments as squeezed "
            f"(got {n_sq}); use draw_warp_mask().")
    return _time_warp_impl(x, is_squeeze, sr=sr, warps=warps,
                           stretch_factor=stretch_factor,
                           squeeze_factor=squeeze_factor)


def draw_warp_mask(key, warps):
    """Uniform random ceil(warps/2)-subset to stretch; returns is_squeeze (warps,) int32."""
    n_stretch = math.ceil(warps / 2)
    perm = jax.random.permutation(key, warps)
    is_stretch = jnp.zeros((warps,), jnp.int32).at[perm[:n_stretch]].set(1)
    return 1 - is_stretch


def time_warp_reference(x_np, is_squeeze_np, sr, warps, stretch_factor, squeeze_factor):
    """Numpy port of the PyTorch/cv2 forward, using direct gather+lerp (no matmul)."""
    total_time = x_np.shape[-1] // sr
    seg_len = int(math.floor((total_time / warps) * sr))
    pieces = []
    for i in range(warps):
        seg = x_np[..., i * seg_len:(i + 1) * seg_len].reshape(-1).astype(np.float64)
        factor = squeeze_factor if is_squeeze_np[i] else stretch_factor
        out_len = int(math.ceil(seg.shape[0] * factor))
        pieces.append(_linear_resize_1d(seg, out_len))
    return np.concatenate(pieces).reshape(1, -1)


if __name__ == "__main__":
    key = jax.random.PRNGKey(0)
    k_x, k_w = jax.random.split(key)

    # Small ECG-like signal: 2 channels, 64 samples at sr=8 -> 4 warp segments of 16.
    sr, warps = 8, 4
    stretch_factor, squeeze_factor = 1.25, 0.75
    x = jax.random.normal(k_x, (2, 64), dtype=jnp.float32)

    is_squeeze = draw_warp_mask(k_w, warps)

    out = time_warp_pallas(
        x, is_squeeze,
        sr=sr, warps=warps,
        stretch_factor=stretch_factor, squeeze_factor=squeeze_factor)
    out = jax.block_until_ready(out)

    ref = time_warp_reference(
        np.asarray(x), np.asarray(is_squeeze),
        sr, warps, stretch_factor, squeeze_factor)

    assert out.shape == ref.shape, (out.shape, ref.shape)
    # bf16 operand storage (matching the MXU's default-precision truncation) gives
    # <~1% relative error; real indexing bugs would show as O(1) errors on N(0,1) data.
    assert np.allclose(np.asarray(out, dtype=np.float64), ref, atol=3e-2, rtol=3e-2)
    print("KERNEL_OK")
</pallas_src>

<mosaic_0001>
module attributes {stable_mosaic.version = 11 : i64} {
  func.func @_time_warp_kernel(%arg0: i32, %arg1: memref<8x256xbf16, #tpu.memory_space<vmem>>, %arg2: memref<256x128xbf16, #tpu.memory_space<vmem>>, %arg3: memref<8x128xf32, #tpu.memory_space<vmem>>) attributes {dimension_semantics = [#tpu.dimension_semantics<parallel>], iteration_bounds = array<i64: 1>, scalar_prefetch = 0 : i64, scratch_operands = 0 : i64, tpu.core_type = #tpu.core_type<tc>, window_params = [{pipeline_mode = #tpu.pipeline_mode<synchronous>, transform_indices = @transform_0, window_bounds = array<i64: 8, 256>}, {transform_indices = @transform_1, window_bounds = array<i64: 256, 128>}, {transform_indices = @transform_2, window_bounds = array<i64: 8, 128>}]} {
    %c0 = arith.constant 0 : index
    %c0_0 = arith.constant 0 : index
    %0 = vector.load %arg1[%c0, %c0_0] : memref<8x256xbf16, #tpu.memory_space<vmem>>, vector<8x256xbf16>
    %c0_1 = arith.constant 0 : index
    %c0_2 = arith.constant 0 : index
    %1 = vector.load %arg2[%c0_1, %c0_2] : memref<256x128xbf16, #tpu.memory_space<vmem>>, vector<256x128xbf16>
    %cst = arith.constant dense<0.000000e+00> : vector<8x128xf32>
    %2 = tpu.matmul %0, %1, %cst {dimension_numbers = #tpu.dot_dimension_numbers<[1], [0], [0], [1], [0, 0, 1, 1], [], []>} : vector<8x256xbf16>, vector<256x128xbf16>, vector<8x128xf32> -> vector<8x128xf32>
    %c0_3 = arith.constant 0 : index
    %c0_4 = arith.constant 0 : index
    %3 = vector.load %arg3[%c0_3, %c0_4] : memref<8x128xf32, #tpu.memory_space<vmem>>, vector<8x128xf32>
    tpu.vector_store %arg3[%c0_3, %c0_4], %2 {strides = array<i32>} : memref<8x128xf32, #tpu.memory_space<vmem>>, vector<8x128xf32>,
    return
  }
  func.func @transform_0(%arg0: i32) -> (i32, i32) {
    %c0_i32 = arith.constant 0 : i32
    %c0_i32_0 = arith.constant 0 : i32
    %c0_i32_1 = arith.constant 0 : i32
    return %c0_i32, %c0_i32_0 : i32, i32
  }
  func.func @transform_1(%arg0: i32) -> (i32, i32) {
    %c0_i32 = arith.constant 0 : i32
    %c0_i32_0 = arith.constant 0 : i32
    return %c0_i32, %arg0 : i32, i32
  }
  func.func @transform_2(%arg0: i32) -> (i32, i32) {
    %c0_i32 = arith.constant 0 : i32
    %c0_i32_0 = arith.constant 0 : i32
    return %c0_i32, %arg0 : i32, i32
  }
}

</mosaic_0001>

<bundles_post_ra>
// kernel: _time_warp_impl.1
= control target key start
LH: loop header
LB: loop body
LE: loop exit
PB: predicated region body
PF: predicated region fallthrough
CT: control target
= control target key end

     0   :  { %s327_s1 = inlined_call_operand.vmem [shape: bf16[256,128], index: 1, kind: input, shape index: {}]   ;;  %s328_s0 = inlined_call_operand.vmem [shape: bf16[8,256], index: 0, kind: input, shape index: {}]   ;;  %s329_s2 = inlined_call_operand.vmem [shape: f32[8,128], index: 2, kind: output, shape index: {}]  }
   0x1   :  { %v249_v0 = vld [vmem:[%s327_s1 + $0x38] sm:$0xff]  ;;  %v248_v2 = vld [vmem:[%s327_s1 + $0x30] sm:$0xff]  ;;  %v247_v4 = vld [vmem:[%s327_s1 + $0x28] sm:$0xff] }
   0x2   :  { %v257_v1 = vld [vmem:[%s327_s1 + $0x78] sm:$0xff]  ;;  %147 = vmatpush.bf16.msra.mxu0 %v249_v0  ;;  %v256_v3 = vld [vmem:[%s327_s1 + $0x70] sm:$0xff]  ;;  %v255_v5 = vld [vmem:[%s327_s1 + $0x68] sm:$0xff] }
   0x3   :  { %160 = vmatpush.bf16.msra.mxu1 %v257_v1  ;;  %v246_v6 = vld [vmem:[%s327_s1 + $0x20] sm:$0xff]  ;;  %v245_v8 = vld [vmem:[%s327_s1 + $0x18] sm:$0xff]  ;;  %v244_v10 = vld [vmem:[%s327_s1 + $0x10] sm:$0xff] }
   0x4   :  { %v254_v7 = vld [vmem:[%s327_s1 + $0x60] sm:$0xff]  ;;  %v253_v9 = vld [vmem:[%s327_s1 + $0x58] sm:$0xff]  ;;  %v252_v11 = vld [vmem:[%s327_s1 + $0x50] sm:$0xff] }
   0x5   :  { %v243_v12 = vld [vmem:[%s327_s1 + $0x8] sm:$0xff]  ;;  %v11_v14 = vld [vmem:[%s328_s0] sm:$0xff] }
   0x6   :  { %148 = vmatpush.bf16.msra.mxu0 %v248_v2  ;;  %v251_v13 = vld [vmem:[%s327_s1 + $0x48] sm:$0xff]  ;;  %v45_v15 = vunpack.c.l.b16 %v11_v14  ;;  %v46_v16 = vunpack.c.h.b16 %v11_v14  ;;  %v242_v17 = vld [vmem:[%s327_s1] sm:$0xff] }
   0x7   :  { %161 = vmatpush.bf16.msra.mxu1 %v256_v3  ;;  %v250_v18 = vld [vmem:[%s327_s1 + $0x40] sm:$0xff] }
   0x8   :  { %v47_v19 = vpack.c.b16 %v45_v15, %v45_v15  ;;  %v48_v20 = vpack.c.b16 %v46_v16, %v46_v16 }
   0xa   :  { %149 = vmatpush.bf16.msra.mxu0 %v247_v4 }
   0xb   :  { %162 = vmatpush.bf16.msra.mxu1 %v255_v5 }
   0xe   :  { %150 = vmatpush.bf16.msra.mxu0 %v246_v6 }
   0xf   :  { %163 = vmatpush.bf16.msra.mxu1 %v254_v7 }
  0x12   :  { %151 = vmatpush.bf16.msra.mxu0 %v245_v8 }
  0x13   :  { %164 = vmatpush.bf16.msra.mxu1 %v253_v9 }
  0x16   :  { %152 = vmatpush.bf16.msra.mxu0 %v244_v10 }
  0x17   :  { %165 = vmatpush.bf16.msra.mxu1 %v252_v11 }
  0x1a   :  { %153 = vmatpush.bf16.msra.mxu0 %v243_v12 }
  0x1b   :  { %166 = vmatpush.bf16.msra.mxu1 %v251_v13 }
  0x1e   :  { %154 = vmatpush.bf16.msra.mxu0 %v242_v17 }
  0x1f   :  { %167 = vmatpush.bf16.msra.mxu1 %v250_v18 }
  0x21   :  { %155 = vmatmul.bf16.vlgmr.msra.gmra.mxu0 %v47_v19 }
  0x22   :  { %168 = vmatmul.bf16.vlgmr.msra.gmra.mxu1 %v48_v20 }
  0x9e   :  { %v156_v21 = vpop.f32.mrf.mxu0 }
  0x9f   :  { %v169_v22 = vpop.f32.mrf.mxu1 }
  0xa0   :  { %v170_v23 = vadd.f32 %v169_v22, %v156_v21 }
  0xa2   :  { %173 = vst [vmem:[%s329_s2] sm:$0xff] %v170_v23 }
  0xa6   :  { %v158_v24 = vpop.f32.mrf.mxu0 }
  0xa7   :  { %v171_v25 = vpop.f32.mrf.mxu1 }

</bundles_post_ra>
